<compile_context>
chip_gen: v7x
topology: tpu7x:2x2x1
jax: 0.10.0
libtpu: 0.0.40
codegen_flags: <defaults>
</compile_context>

<pallas_src>
import functools

import jax
import jax.numpy as jnp
from jax import lax
from jax.experimental import pallas as pl
from jax.experimental.pallas import tpu as pltpu


_D_CHUNK = 512  # lanes per reduction chunk (multiple of 128)


def _vmem_budgets(itemsize):
    """Generation-specific (per-input-buffer budget, vmem_limit_bytes)."""
    try:
        vmem_cap = pltpu.get_tpu_info().vmem_capacity_bytes
    except Exception:
        vmem_cap = 64 * 1024 * 1024  # conservative (v7x-sized) fallback
    if vmem_cap >= 96 * 1024 * 1024:
        # v5e / v6e: 128 MiB physical VMEM.  2 inputs x 2 pipeline buffers x 8 MiB
        # plus bounded (TB, 512) f32 chunk temporaries fits comfortably in 64 MiB.
        return 8 * 1024 * 1024, 64 * 1024 * 1024
    # v7x: 64 MiB physical VMEM.  Stay mem-bound-correct rather than greedy.
    per_buffer = (2 if itemsize < 4 else 4) * 1024 * 1024
    return per_buffer, 40 * 1024 * 1024


def _choose_tile_b(B, D, itemsize, per_buffer_budget):
    """Batch-tile size: sublane-aligned, purely bytes-bounded, never taller than B."""
    # Sub-32-bit dtypes pack along sublanes: 8 rows for 4B, 16 for 2B, 32 for 1B.
    align = {4: 8, 2: 16, 1: 32}.get(itemsize, 8)
    if B <= align:
        # Single block covering the full (small) batch; block dims == array dims.
        return B
    # Bytes-based cap only (no fixed row cap): rows per tile from the budget.
    tb = per_buffer_budget // max(1, D * itemsize)
    tb = max(align, (tb // align) * align)
    # Never taller than the array (last tile may still be partial).
    tb = min(tb, (B // align) * align)
    # Prefer >= 2 tiles when the batch allows it: keeps both v7x TensorCores /
    # DMA streams busy (and costs only ~0.35us extra on single-core chips).
    if tb >= B and B >= 2 * align:
        half = (B + 1) // 2
        tb = max(align, ((half + align - 1) // align) * align)
        tb = min(tb, (B // align) * align)
    return tb


def _row_stats(x1_ref, x2_ref, tile_b, d_chunk):
    """(dot, |x1|^2, |x2|^2) per row, each (tile_b, 1) f32, chunked over D.

    Chunking bounds the f32 cast/product temporaries to (tile_b, d_chunk)
    regardless of how large the HBM-side tile is (key for bf16 inputs and for
    v7x's 64 MiB VMEM).
    """
    D = x1_ref.shape[-1]

    def chunk_stats(x1c, x2c):
        a = x1c.astype(jnp.float32)
        b = x2c.astype(jnp.float32)
        return (jnp.sum(a * b, axis=-1, keepdims=True),
                jnp.sum(a * a, axis=-1, keepdims=True),
                jnp.sum(b * b, axis=-1, keepdims=True))

    if D <= d_chunk:
        return chunk_stats(x1_ref[...], x2_ref[...])

    n_full = D // d_chunk
    zeros = jnp.zeros((tile_b, 1), jnp.float32)

    def body(c, carry):
        dot, s1, s2 = carry
        start = pl.multiple_of(c * d_chunk, d_chunk)
        d, a, b = chunk_stats(x1_ref[:, pl.ds(start, d_chunk)],
                              x2_ref[:, pl.ds(start, d_chunk)])
        return (dot + d, s1 + a, s2 + b)

    dot, s1, s2 = lax.fori_loop(0, n_full, body, (zeros, zeros, zeros))

    rem = D - n_full * d_chunk
    if rem:  # static remainder chunk
        d, a, b = chunk_stats(x1_ref[:, n_full * d_chunk:],
                              x2_ref[:, n_full * d_chunk:])
        dot, s1, s2 = dot + d, s1 + a, s2 + b
    return dot, s1, s2


def _cosine_loss_kernel(x1_ref, x2_ref, out_ref, *, tile_b, batch, d_chunk, mask_last):
    dot, s1, s2 = _row_stats(x1_ref, x2_ref, tile_b, d_chunk)

    # 1 / max(||x||, eps) == rsqrt(max(||x||^2, eps^2))  -> EUP slot, no VPU divide.
    eps_sq = jnp.float32(1e-16)
    inv_n1 = lax.rsqrt(jnp.maximum(s1, eps_sq))
    inv_n2 = lax.rsqrt(jnp.maximum(s2, eps_sq))
    loss = 1.0 - dot * inv_n1 * inv_n2                       # (tile_b, 1)

    if not mask_last:
        # B divides tile_b: no padded rows anywhere, mask compiled out.
        out_ref[...] = jnp.full(out_ref.shape, jnp.sum(loss), dtype=jnp.float32)
    else:
        i = pl.program_id(0)
        last = pl.num_programs(0) - 1

        @pl.when(i != last)
        def _():
            out_ref[...] = jnp.full(out_ref.shape, jnp.sum(loss), dtype=jnp.float32)

        @pl.when(i == last)
        def _():
            # Zero-contribution for padded rows of the partial last block
            # (select also stops any NaN/Inf from garbage rows propagating).
            row_ids = i * tile_b + lax.broadcasted_iota(jnp.int32, (tile_b, 1), 0)
            masked = jnp.where(row_ids < batch, loss, 0.0)
            out_ref[...] = jnp.full(out_ref.shape, jnp.sum(masked), dtype=jnp.float32)


def cosine_embedding_loss(input1, input2, margin: float = 0.0):
    """Scalar cosine-embedding loss with an all-ones target, computed in Pallas.

    input1, input2: [B, D]. Returns a float32 scalar.
    `margin` is unused because target == 1 for every row (matches the module).
    """
    assert input1.shape == input2.shape and input1.ndim == 2
    B, D = input1.shape
    itemsize = jnp.dtype(input1.dtype).itemsize

    per_buffer, vmem_limit = _vmem_budgets(itemsize)
    tile_b = _choose_tile_b(B, D, itemsize, per_buffer)
    num_tiles = pl.cdiv(B, tile_b)
    mask_last = (B % tile_b) != 0

    kernel = functools.partial(
        _cosine_loss_kernel,
        tile_b=tile_b, batch=B, d_chunk=_D_CHUNK, mask_last=mask_last)

    cost = pl.CostEstimate(
        flops=6 * B * D,                       # 3 products + 3 reductions per element
        transcendentals=2 * B,                 # two rsqrt per row
        bytes_accessed=2 * B * D * itemsize + num_tiles * 128 * 4,
    )

    partials = pl.pallas_call(
        kernel,
        out_shape=jax.ShapeDtypeStruct((num_tiles, 1, 128), jnp.float32),
        grid=(num_tiles,),
        in_specs=[
            pl.BlockSpec((tile_b, D), lambda i: (i, 0)),
            pl.BlockSpec((tile_b, D), lambda i: (i, 0)),
        ],
        out_specs=pl.BlockSpec((1, 1, 128), lambda i: (i, 0, 0)),
        compiler_params=pltpu.CompilerParams(
            dimension_semantics=("parallel",),
            vmem_limit_bytes=vmem_limit,
        ),
        cost_estimate=cost,
    )(input1, input2)

    # Tiny final reduction over the per-tile partial sums; divide by the true B.
    return jnp.sum(partials[:, 0, 0]) / jnp.float32(B)


if __name__ == "__main__":
    key = jax.random.PRNGKey(0)
    k1, k2, k3, k4, k5, k6 = jax.random.split(key, 6)

    def ref_loss(a, b):
        eps = 1e-8
        dot = jnp.sum(a * b, axis=-1)
        n1 = jnp.maximum(jnp.linalg.norm(a, axis=-1), eps)
        n2 = jnp.maximum(jnp.linalg.norm(b, axis=-1), eps)
        return jnp.mean(1.0 - dot / (n1 * n2))

    # Small shapes consistent with the module's [B, D] contract.
    B, D = 8, 32
    x1 = jax.random.normal(k1, (B, D), dtype=jnp.float32)
    x2 = jax.random.normal(k2, (B, D), dtype=jnp.float32)
    loss = cosine_embedding_loss(x1, x2, margin=0.0)
    jax.block_until_ready(loss)
    assert jnp.allclose(loss, ref_loss(x1, x2), atol=1e-5, rtol=1e-5), (loss, ref_loss(x1, x2))

    # B not a multiple of the batch tile -> multi-tile pipelining + last-tile masking.
    B2, D2 = 20, 48
    y1 = jax.random.normal(k3, (B2, D2), dtype=jnp.float32)
    y2 = jax.random.normal(k4, (B2, D2), dtype=jnp.float32)
    loss2 = cosine_embedding_loss(y1, y2)
    jax.block_until_ready(loss2)
    assert jnp.allclose(loss2, ref_loss(y1, y2), atol=1e-5, rtol=1e-5), (loss2, ref_loss(y1, y2))

    # D > chunk size -> exercises the chunked reduction (full chunk + remainder).
    B3, D3 = 8, 640
    z1 = jax.random.normal(k5, (B3, D3), dtype=jnp.float32)
    z2 = jax.random.normal(k6, (B3, D3), dtype=jnp.float32)
    loss3 = cosine_embedding_loss(z1, z2)
    jax.block_until_ready(loss3)
    assert jnp.allclose(loss3, ref_loss(z1, z2), atol=1e-5, rtol=1e-5), (loss3, ref_loss(z1, z2))

    print("KERNEL_OK")
</pallas_src>

<mosaic_0001>
module attributes {stable_mosaic.version = 11 : i64} {
  func.func @_cosine_loss_kernel(%arg0: i32, %arg1: memref<8x32xf32, #tpu.memory_space<vmem>>, %arg2: memref<8x32xf32, #tpu.memory_space<vmem>>, %arg3: memref<1x1x128xf32, #tpu.memory_space<vmem>>) attributes {dimension_semantics = [#tpu.dimension_semantics<parallel>], iteration_bounds = array<i64: 1>, scalar_prefetch = 0 : i64, scratch_operands = 0 : i64, tpu.core_type = #tpu.core_type<tc>, window_params = [{transform_indices = @transform_0, window_bounds = array<i64: 8, 32>}, {transform_indices = @transform_1, window_bounds = array<i64: 8, 32>}, {transform_indices = @transform_2, window_bounds = array<i64: 1, 1, 128>}]} {
    %c0 = arith.constant 0 : index
    %c0_0 = arith.constant 0 : index
    %0 = vector.load %arg1[%c0, %c0_0] : memref<8x32xf32, #tpu.memory_space<vmem>>, vector<8x32xf32>
    %c0_1 = arith.constant 0 : index
    %c0_2 = arith.constant 0 : index
    %1 = vector.load %arg2[%c0_1, %c0_2] : memref<8x32xf32, #tpu.memory_space<vmem>>, vector<8x32xf32>
    %2 = arith.mulf %0, %1 : vector<8x32xf32>
    %cst = arith.constant dense<0.000000e+00> : vector<8xf32>
    %3 = vector.multi_reduction <add>, %2, %cst [1] : vector<8x32xf32> to vector<8xf32>
    %4 = vector.shape_cast %3 : vector<8xf32> to vector<8x1xf32>
    %5 = arith.mulf %0, %0 : vector<8x32xf32>
    %cst_3 = arith.constant dense<0.000000e+00> : vector<8xf32>
    %6 = vector.multi_reduction <add>, %5, %cst_3 [1] : vector<8x32xf32> to vector<8xf32>
    %7 = vector.shape_cast %6 : vector<8xf32> to vector<8x1xf32>
    %8 = arith.mulf %1, %1 : vector<8x32xf32>
    %cst_4 = arith.constant dense<0.000000e+00> : vector<8xf32>
    %9 = vector.multi_reduction <add>, %8, %cst_4 [1] : vector<8x32xf32> to vector<8xf32>
    %10 = vector.shape_cast %9 : vector<8xf32> to vector<8x1xf32>
    %cst_5 = arith.constant 1.000000e-16 : f32
    %11 = vector.broadcast %cst_5 : f32 to vector<8x1xf32>
    %12 = arith.maximumf %7, %11 : vector<8x1xf32>
    %13 = math.rsqrt %12 : vector<8x1xf32>
    %cst_6 = arith.constant 1.000000e-16 : f32
    %14 = vector.broadcast %cst_6 : f32 to vector<8x1xf32>
    %15 = arith.maximumf %10, %14 : vector<8x1xf32>
    %16 = math.rsqrt %15 : vector<8x1xf32>
    %17 = arith.mulf %4, %13 : vector<8x1xf32>
    %18 = arith.mulf %17, %16 : vector<8x1xf32>
    %cst_7 = arith.constant 1.000000e+00 : f32
    %19 = vector.broadcast %cst_7 : f32 to vector<8x1xf32>
    %20 = arith.subf %19, %18 : vector<8x1xf32>
    %21 = vector.shape_cast %20 : vector<8x1xf32> to vector<1x8x1xf32>
    %cst_8 = arith.constant dense<0.000000e+00> : vector<1xf32>
    %22 = vector.multi_reduction <add>, %21, %cst_8 [1, 2] : vector<1x8x1xf32> to vector<1xf32>
    %23 = vector.shape_cast %22 : vector<1xf32> to vector<1x1x1xf32>
    %24 = vector.extract %23[0, 0, 0] : f32 from vector<1x1x1xf32>
    %25 = vector.broadcast %24 : f32 to vector<1x1x128xf32>
    %c0_9 = arith.constant 0 : index
    %c0_10 = arith.constant 0 : index
    %c0_11 = arith.constant 0 : index
    %26 = vector.load %arg3[%c0_9, %c0_10, %c0_11] : memref<1x1x128xf32, #tpu.memory_space<vmem>>, vector<1x1x128xf32>
    tpu.vector_store %arg3[%c0_9, %c0_10, %c0_11], %25 {strides = array<i32>} : memref<1x1x128xf32, #tpu.memory_space<vmem>>, vector<1x1x128xf32>,
    return
  }
  func.func @transform_0(%arg0: i32) -> (i32, i32) {
    %c0_i32 = arith.constant 0 : i32
    %c0_i32_0 = arith.constant 0 : i32
    return %arg0, %c0_i32 : i32, i32
  }
  func.func @transform_1(%arg0: i32) -> (i32, i32) {
    %c0_i32 = arith.constant 0 : i32
    %c0_i32_0 = arith.constant 0 : i32
    return %arg0, %c0_i32 : i32, i32
  }
  func.func @transform_2(%arg0: i32) -> (i32, i32, i32) {
    %c0_i32 = arith.constant 0 : i32
    %c0_i32_0 = arith.constant 0 : i32
    %c0_i32_1 = arith.constant 0 : i32
    return %arg0, %c0_i32, %c0_i32_0 : i32, i32, i32
  }
}

</mosaic_0001>

<bundles_post_ra>
// kernel: tpu_custom_call.1
= control target key start
LH: loop header
LB: loop body
LE: loop exit
PB: predicated region body
PF: predicated region fallthrough
CT: control target
= control target key end

     0   :  { %7 = vsyncpa [#allocation3], 0  ;;  %s222_s0 = inlined_call_operand.hbm [shape: f32[8,32], index: 0, kind: input, shape index: {}]   ;;  %s223_s1 = inlined_call_operand.hbm [shape: f32[8,32], index: 1, kind: input, shape index: {}]   ;;  %s224_s2 = inlined_call_operand.hbm [shape: f32[1,1,128], index: 2, kind: output, shape index: {}]  }
   0x1   :  { %8 = vsyncpa [#allocation6], 0 }
   0x2   :  { %9 = vsyncpa [#allocation4], 0  ;;  %s168_s9 = smov [#allocation2]   ;;  %s169_s11 = smov [#allocation5]  }
   0x3   :  { %s16_s10 = sshll.u32 %s168_s9, 4  ;;  %s26_s12 = sshll.u32 %s169_s11, 4  ;;  %s17_s10 = int_to_ptr.vmem [resolvable:$true] %s16_s10  ;;  %s27_s12 = int_to_ptr.vmem [resolvable:$true] %s26_s12 }
   0x4   :  { %s96_s15 = scalar_lea.hbm %s222_s0, 128 }
   0x5   :  { %p97_p0 = scmp.ne.s32.totalorder %s222_s0, %s96_s15  ;;  %p100_p1 = scmp.lt.u32.totalorder %s96_s15, %s222_s0 }
   0x7   :  { %p102_p2 = pnand %p100_p1, %p97_p0 }
   0x9   :  { %105 = shalt.err (!%p102_p2)
}
   0xa   :  { %s106_s20 = scalar_lea.vmem %s17_s10, 128  ;;  %p111_p4 = scmp.lt.s32.totalorder %s17_s10, %s17_s10 }
   0xb   :  { %p107_p3 = scmp.ne.s32.totalorder %s17_s10, %s106_s20  ;;  %p112_p5 = scmp.lt.s32.totalorder %s106_s20, %s106_s20 }
   0xd   :  { %p113_p6 = por %p112_p5, %p111_p4 }
   0xf   :  { %p114_p7 = pnand %p113_p6, %p107_p3 }
  0x11   :  { %117 = shalt.err (!%p114_p7)
}
  0x12   :  { %19 = dma.hbm_to_vmem [thread:$0]  %s222_s0, 128, %s17_s10, [#allocation3]  }
  0x13   :  { %s118_s25 = scalar_lea.hbm %s223_s1, 128 }
  0x14   :  { %p119_p8 = scmp.ne.s32.totalorder %s223_s1, %s118_s25  ;;  %p122_p9 = scmp.lt.u32.totalorder %s118_s25, %s223_s1 }
  0x16   :  { %p124_p10 = pnand %p122_p9, %p119_p8 }
  0x18   :  { %127 = shalt.err (!%p124_p10)
}
  0x19   :  { %s128_s30 = scalar_lea.vmem %s27_s12, 128  ;;  %p133_p12 = scmp.lt.s32.totalorder %s27_s12, %s27_s12 }
  0x1a   :  { %p129_p11 = scmp.ne.s32.totalorder %s27_s12, %s128_s30  ;;  %p134_p13 = scmp.lt.s32.totalorder %s128_s30, %s128_s30 }
  0x1c   :  { %p135_p0 = por %p134_p13, %p133_p12 }
  0x1e   :  { %p136_p1 = pnand %p135_p0, %p129_p11 }
  0x20   :  { %139 = shalt.err (!%p136_p1)
}
  0x21   :  { %29 = dma.hbm_to_vmem [thread:$0]  %s223_s1, 128, %s27_s12, [#allocation6]  }
  0x22   :  { %162 = dma.done.wait [#allocation3], 128  }
  0x23   :  { %163 = vsyncadd [#allocation3], 4294967168 }
  0x24   :  { %164 = dma.done.wait [#allocation6], 128  }
  0x25   :  { %165 = vsyncadd [#allocation6], 4294967168  ;;  %v36_v0 = vld [vmem:[#allocation2] sm:$0xff]  ;;  %vm39_vm0 = vcmask 261120   ;;  %v37_v1 = vld [vmem:[#allocation5] sm:$0xff]  ;;  %vm58_vm1 = vcmask 7168  }
  0x26   :  { %v43_v2 = vmul.f32 %v36_v0, %v36_v0  ;;  %v47_v3 = vmul.f32 %v37_v1, %v37_v1  ;;  %v38_v4 = vmul.f32 %v37_v1, %v36_v0  ;;  %s170_s1 = smov [#allocation7]  }
  0x27   :  { %s77_s4 = sshll.u32 %s170_s1, 4  ;;  %s78_s4 = int_to_ptr.vmem [resolvable:$true] %s77_s4 }
  0x28   :  { %v44_v5 = vsel %vm39_vm0, %v43_v2, 0.0  ;;  %v40_v6 = vsel %vm39_vm0, %v38_v4, 0.0  ;;  %v48_v7 = vsel %vm39_vm0, %v47_v3, 0.0  ;;  %s140_s6 = scalar_lea.vmem %s78_s4, 16  ;;  %s144_s7 = scalar_lea.vmem %s78_s4, 32 }
  0x29   :  { %45 = vadd.xlane.f32.xlu0 %v44_v5  ;;  %41 = vadd.xlane.f32.xlu1 %v40_v6  ;;  %p141_p2 = scmp.ne.s32.totalorder %s78_s4, %s140_s6  ;;  %p145_p3 = scmp.lt.s32.totalorder %s78_s4, %s78_s4 }
  0x2a   :  { %p146_p4 = scmp.lt.s32.totalorder %s144_s7, %s140_s6 }
  0x2c   :  { %p147_p5 = por %p146_p4, %p145_p3 }
  0x2d   :  { %49 = vadd.xlane.f32.xlu0 %v48_v7 }
  0x2e   :  { %p148_p6 = pnand %p147_p5, %p141_p2 }
  0xb6   :  { %v46_v8 = vpop.xlane.xlu0 %45  ;;  %v42_v13 = vpop.xlane.xlu1 %41 }
  0xb7   :  { %v51_v9 = vmax.f32 %v46_v8, 1e-16 }
  0xb9   :  { %92 = vrsqrt.f32 %v51_v9 }
  0xba   :  { %v50_v10 = vpop.xlane.xlu0 %49 }
  0xbb   :  { %v53_v11 = vmax.f32 %v50_v10, 1e-16 }
  0xbd   :  { %94 = vrsqrt.f32 %v53_v11 }
  0xc3   :  { %v93_v12 = vpop.eup %92 }
  0xc4   :  { %v55_v14 = vmul.f32 %v93_v12, %v42_v13 }
  0xc7   :  { %v95_v15 = vpop.eup %94 }
  0xc8   :  { %v56_v16 = vmul.f32 %v95_v15, %v55_v14 }
  0xca   :  { %v57_v17 = vsub.f32 1.0, %v56_v16 }
  0xcc   :  { %v59_v18 = vsel %vm58_vm1, %v57_v17, 0.0 }
  0xcd   :  { %60 = vadd.xlane.f32.xlu1 %v59_v18 }
 0x15a   :  { %v61_v19 = vpop.xlane.xlu1 %60 }
 0x15b   :  { %v62_v20 = vrot.slane %v61_v19, 4 }
 0x15d   :  { %v63_v21 = vadd.f32 %v62_v20, %v61_v19 }
 0x15f   :  { %v64_v22 = vrot.slane %v63_v21, 2 }
 0x161   :  { %v65_v23 = vadd.f32 %v64_v22, %v63_v21 }
 0x163   :  { %v66_v24 = vrot.slane %v65_v23, 1 }
 0x165   :  { %v67_v25 = vadd.f32 %v66_v24, %v65_v23 }
 0x167   :  { %87 = vpush %v67_v25 }
 0x198   :  { %s88_s5 = spop %87 }
 0x199   :  { %v69_v26 = vstv %s88_s5 }
 0x19a   :  { %70 = vst [vmem:[#allocation7] sm:$0x1] %v69_v26 }
 0x19b   :  { %151 = shalt.err (!%p148_p6)
}
 0x19c   :  { %s152_s10 = scalar_lea.hbm %s224_s2, 16 }
 0x19d   :  { %p153_p7 = scmp.ne.s32.totalorder %s224_s2, %s152_s10  ;;  %p156_p8 = scmp.lt.u32.totalorder %s152_s10, %s224_s2 }
 0x19f   :  { %p158_p9 = pnand %p156_p8, %p153_p7 }
 0x1a1   :  { %161 = shalt.err (!%p158_p9)
}
 0x1a2   :  { %80 = dma.vmem_to_hbm [thread:$0]  %s78_s4, 16, %s224_s2, [#allocation4]  }
 0x1a3   :  { %166 = dma.done.wait [#allocation4], 16  }
 0x1a4   :  { %167 = vsyncadd [#allocation4], 4294967280 }
 0x1a5   :  { %84 = vsyncpa [#allocation3], 1 }
 0x1a6   :  { %85 = vsyncpa [#allocation6], 1 }
 0x1a7   :  { %86 = vsyncpa [#allocation4], 1 }

</bundles_post_ra>
